<compile_context>
chip_gen: v6e
topology: v6e:2x2x1
jax: 0.10.0
libtpu: 0.0.40
codegen_flags: <defaults>
</compile_context>

<pallas_src>
import functools

import jax
import jax.numpy as jnp
from jax.experimental import pallas as pl
from jax.experimental.pallas import tpu as pltpu


def _argmax_first(x, n):
    """First-occurrence argmax along the last axis, keepdims, int32.

    Matches torch.max(...,-1)[1] / torch.mode tie-breaking (smallest index /
    smallest modal value).
    """
    m = jnp.max(x, axis=-1, keepdims=True)
    idx = jax.lax.broadcasted_iota(jnp.int32, x.shape, x.ndim - 1)
    return jnp.min(jnp.where(x == m, idx, n), axis=-1, keepdims=True)


def ensemble_kernel(patches_ref, wc_ref, bc_ref, wf_ref, bf_ref, votes_ref, *,
                    spatial):
    """One grid step = one independent batch tile; all K members handled inside."""
    num_members, hmax, nc = wf_ref.shape
    rows = patches_ref.shape[0]
    bt = rows // spatial                                   # samples in this tile

    # Conv for ALL members at once: (Bt*S, CP) @ (CP, K*Hmax), bf16 -> f32 acc.
    h = jnp.dot(patches_ref[...], wc_ref[...], preferred_element_type=jnp.float32)
    h = jnp.maximum(h + bc_ref[...], 0.0)                  # bias + ReLU

    # Global average pool: in-kernel reduction over the spatial axis
    # (replaces the old dense (B, B*S) pooling matmul).
    feat = jnp.sum(h.reshape(bt, spatial, num_members * hmax), axis=1)
    feat = feat * (1.0 / spatial)                          # (Bt, K*Hmax)

    # Per-member classifier head + vote accumulation (K is small -> unrolled).
    # f32 counts are exact for K < 2**24 members.
    counts = jnp.zeros((bt, nc), jnp.float32)
    cls_idx = jax.lax.broadcasted_iota(jnp.int32, (bt, nc), 1)
    for k in range(num_members):
        logits = jnp.dot(feat[:, k * hmax:(k + 1) * hmax], wf_ref[k],
                         preferred_element_type=jnp.float32) + bf_ref[k]
        pred = _argmax_first(logits, nc)                   # (Bt, 1) int32
        counts = counts + (pred == cls_idx).astype(jnp.float32)

    # Mode over models = argmax of vote counts (smallest class on ties).
    votes_ref[...] = _argmax_first(counts, nc)


def _pick_samples_per_tile(batch, spatial, cp, *, target_bytes=2 << 20):
    """Largest batch tile whose bf16 patch block is ~target_bytes, divides B,
    and (when < B) is a multiple of 8 so the (Bt, 1) output block stays legal."""
    cap = max(1, target_bytes // (spatial * cp * 2))
    if batch <= cap:
        return batch
    for d in range(int(cap), 0, -1):
        if batch % d == 0 and d % 8 == 0:
            return d
    return batch


def hetero_feat_avg_ensemble_forward(x, conv_w, conv_b, fc_w, fc_b,
                                     *, samples_per_tile=None):
    """x: (B, C, H, W) NCHW float32.
    conv_w: (K, Hmax, C, KH, KW), conv_b: (K, Hmax)   (zero-padded hetero widths)
    fc_w:   (K, Hmax, NC),        fc_b:   (K, NC)
    Returns majority-vote class indices, shape (B,), int32.

    NOTE: correctness of the Hmax zero-padding relies on padded conv filters,
    padded conv biases and padded fc rows being exactly zero.
    """
    B, C, H, W = x.shape
    K, Hmax, _, KH, KW = conv_w.shape
    NC = fc_w.shape[-1]
    S = H * W
    CP = C * KH * KW

    # ---- glue: im2col for the 'SAME' (pad=1) conv, patch order (C, kh, kw) ----
    # TODO(synk): fold the im2col into the kernel (sum of KH*KW shifted matmuls
    # over an NHWC block) to avoid materializing the 9x patch matrix in HBM.
    xp = jnp.pad(x, ((0, 0), (0, 0), (KH // 2, KH // 2), (KW // 2, KW // 2)))
    patches = jnp.stack(
        [xp[:, :, i:i + H, j:j + W] for i in range(KH) for j in range(KW)], axis=2)
    patches = patches.transpose(0, 3, 4, 1, 2).reshape(B * S, CP)
    patches = patches.astype(jnp.bfloat16)                 # streamed operand -> bf16

    # All member conv weights stacked on the lane (output-channel) axis.
    wc = (conv_w.reshape(K, Hmax, CP).transpose(2, 0, 1)
          .reshape(CP, K * Hmax).astype(jnp.bfloat16))     # (CP, K*Hmax)
    bc = conv_b.reshape(1, K * Hmax).astype(jnp.float32)
    wf = fc_w.astype(jnp.float32)                          # (K, Hmax, NC)
    bf = fc_b.reshape(K, 1, NC).astype(jnp.float32)

    if samples_per_tile is None:
        samples_per_tile = _pick_samples_per_tile(B, S, CP)
    Bt = samples_per_tile
    rows = Bt * S
    grid = (B // Bt,)

    kernel = functools.partial(ensemble_kernel, spatial=S)
    votes = pl.pallas_call(
        kernel,
        out_shape=jax.ShapeDtypeStruct((B, 1), jnp.int32),
        grid=grid,
        in_specs=[
            pl.BlockSpec((rows, CP), lambda i: (i, 0)),        # patches (batch-tiled)
            pl.BlockSpec((CP, K * Hmax), lambda i: (0, 0)),    # conv weights (resident)
            pl.BlockSpec((1, K * Hmax), lambda i: (0, 0)),     # conv bias (resident)
            pl.BlockSpec((K, Hmax, NC), lambda i: (0, 0, 0)),  # fc weights (resident)
            pl.BlockSpec((K, 1, NC), lambda i: (0, 0, 0)),     # fc bias (resident)
        ],
        out_specs=pl.BlockSpec((Bt, 1), lambda i: (i, 0)),
        compiler_params=pltpu.CompilerParams(
            dimension_semantics=("parallel",),                 # megacore on v7x
            vmem_limit_bytes=32 * 1024 * 1024),
    )(patches, wc, bc, wf, bf)
    return votes[:, 0]


if __name__ == "__main__":
    B, C, H, W = 2, 4, 16, 16
    NC = 10
    hidden = [8, 16, 32]          # heterogeneous branch widths
    K = len(hidden)
    Hmax = max(hidden)
    KH = KW = 3

    key = jax.random.PRNGKey(0)
    keys = jax.random.split(key, 1 + 4 * K)
    x = jax.random.normal(keys[0], (B, C, H, W), jnp.float32)

    # Deterministic synthetic parameters (zero-padded to Hmax for hetero widths).
    conv_w = jnp.zeros((K, Hmax, C, KH, KW), jnp.float32)
    conv_b = jnp.zeros((K, Hmax), jnp.float32)
    fc_w = jnp.zeros((K, Hmax, NC), jnp.float32)
    fc_b = jnp.zeros((K, NC), jnp.float32)
    for k, hk in enumerate(hidden):
        kw_, kb_, kf_, kfb_ = keys[1 + 4 * k: 1 + 4 * (k + 1)]
        conv_w = conv_w.at[k, :hk].set(
            0.2 * jax.random.normal(kw_, (hk, C, KH, KW), jnp.float32))
        conv_b = conv_b.at[k, :hk].set(
            0.1 * jax.random.normal(kb_, (hk,), jnp.float32))
        fc_w = fc_w.at[k, :hk].set(
            0.2 * jax.random.normal(kf_, (hk, NC), jnp.float32))
        fc_b = fc_b.at[k].set(0.1 * jax.random.normal(kfb_, (NC,), jnp.float32))

    votes = jax.block_until_ready(
        hetero_feat_avg_ensemble_forward(x, conv_w, conv_b, fc_w, fc_b))

    # Pure-JAX reference with the same semantics as the PyTorch ensemble forward.
    # The conv path uses bf16 operands with f32 accumulation, matching the
    # kernel's deliberate bf16 streaming precision; agreement is validated on
    # the votes (argmax), which is the module's contract.
    def ref_votes(x):
        xb = x.astype(jnp.bfloat16)
        preds = []
        for k in range(K):
            y = jax.lax.conv_general_dilated(
                xb, conv_w[k].astype(jnp.bfloat16), (1, 1), "SAME",
                dimension_numbers=("NCHW", "OIHW", "NCHW"),
                preferred_element_type=jnp.float32)
            y = jnp.maximum(y + conv_b[k][None, :, None, None], 0.0)
            feat = y.mean(axis=(2, 3))                  # global average pool
            logits = feat @ fc_w[k] + fc_b[k]
            preds.append(jnp.argmax(logits, axis=-1))   # torch.max(pred,-1)[1]
        v = jnp.stack(preds)                            # (K, B) votes
        counts = (v[:, :, None] == jnp.arange(NC)[None, None, :]).sum(0)
        return jnp.argmax(counts, axis=-1)              # torch.mode over dim 0

    expected = ref_votes(x)
    assert votes.shape == (B,) and votes.dtype == jnp.int32, (votes.shape, votes.dtype)
    assert bool(jnp.all(votes == expected)), (votes, expected)
    print("KERNEL_OK")
</pallas_src>

<mosaic_0001>
module attributes {stable_mosaic.version = 11 : i64} {
  func.func @ensemble_kernel(%arg0: i32, %arg1: memref<512x36xbf16, #tpu.memory_space<vmem>>, %arg2: memref<36x96xbf16, #tpu.memory_space<vmem>>, %arg3: memref<1x96xf32, #tpu.memory_space<vmem>>, %arg4: memref<3x32x10xf32, #tpu.memory_space<vmem>>, %arg5: memref<3x1x10xf32, #tpu.memory_space<vmem>>, %arg6: memref<2x1xi32, #tpu.memory_space<vmem>>) attributes {dimension_semantics = [#tpu.dimension_semantics<parallel>], iteration_bounds = array<i64: 1>, scalar_prefetch = 0 : i64, scratch_operands = 0 : i64, tpu.core_type = #tpu.core_type<tc>, window_params = [{transform_indices = @transform_0, window_bounds = array<i64: 512, 36>}, {pipeline_mode = #tpu.pipeline_mode<synchronous>, transform_indices = @transform_1, window_bounds = array<i64: 36, 96>}, {pipeline_mode = #tpu.pipeline_mode<synchronous>, transform_indices = @transform_2, window_bounds = array<i64: 1, 96>}, {pipeline_mode = #tpu.pipeline_mode<synchronous>, transform_indices = @transform_3, window_bounds = array<i64: 3, 32, 10>}, {pipeline_mode = #tpu.pipeline_mode<synchronous>, transform_indices = @transform_4, window_bounds = array<i64: 3, 1, 10>}, {transform_indices = @transform_5, window_bounds = array<i64: 2, 1>}]} {
    %c0 = arith.constant 0 : index
    %c0_0 = arith.constant 0 : index
    %0 = vector.load %arg1[%c0, %c0_0] : memref<512x36xbf16, #tpu.memory_space<vmem>>, vector<512x36xbf16>
    %c0_1 = arith.constant 0 : index
    %c0_2 = arith.constant 0 : index
    %1 = vector.load %arg2[%c0_1, %c0_2] : memref<36x96xbf16, #tpu.memory_space<vmem>>, vector<36x96xbf16>
    %cst = arith.constant dense<0.000000e+00> : vector<512x96xf32>
    %2 = tpu.matmul %0, %1, %cst {dimension_numbers = #tpu.dot_dimension_numbers<[1], [0], [0], [1], [0, 0, 1, 1], [], []>} : vector<512x36xbf16>, vector<36x96xbf16>, vector<512x96xf32> -> vector<512x96xf32>
    %c0_3 = arith.constant 0 : index
    %c0_4 = arith.constant 0 : index
    %3 = vector.load %arg3[%c0_3, %c0_4] : memref<1x96xf32, #tpu.memory_space<vmem>>, vector<1x96xf32>
    %4 = vector.broadcast %3 : vector<1x96xf32> to vector<512x96xf32>
    %5 = arith.addf %2, %4 : vector<512x96xf32>
    %cst_5 = arith.constant 0.000000e+00 : f32
    %6 = vector.broadcast %cst_5 : f32 to vector<512x96xf32>
    %7 = arith.maximumf %5, %6 : vector<512x96xf32>
    %8 = vector.shape_cast %7 : vector<512x96xf32> to vector<2x256x96xf32>
    %cst_6 = arith.constant dense<0.000000e+00> : vector<2x96xf32>
    %9 = vector.multi_reduction <add>, %8, %cst_6 [1] : vector<2x256x96xf32> to vector<2x96xf32>
    %cst_7 = arith.constant 3.906250e-03 : f32
    %10 = vector.broadcast %cst_7 : f32 to vector<2x96xf32>
    %11 = arith.mulf %9, %10 : vector<2x96xf32>
    %cst_8 = arith.constant 0.000000e+00 : f32
    %12 = vector.broadcast %cst_8 : f32 to vector<2x10xf32>
    %13 = tpu.iota {dimensions = array<i32: 1>} : vector<2x10xi32>
    %14 = vector.extract_strided_slice %11 {offsets = [0, 0], sizes = [2, 32], strides = [1, 1]} : vector<2x96xf32> to vector<2x32xf32>
    %c0_9 = arith.constant 0 : index
    %c0_10 = arith.constant 0 : index
    %c0_11 = arith.constant 0 : index
    %15 = vector.load %arg4[%c0_9, %c0_10, %c0_11] : memref<3x32x10xf32, #tpu.memory_space<vmem>>, vector<1x32x10xf32>
    %16 = vector.shape_cast %15 : vector<1x32x10xf32> to vector<32x10xf32>
    %cst_12 = arith.constant dense<0.000000e+00> : vector<2x10xf32>
    %17 = tpu.matmul %14, %16, %cst_12 {dimension_numbers = #tpu.dot_dimension_numbers<[1], [0], [0], [1], [0, 0, 1, 1], [], []>} : vector<2x32xf32>, vector<32x10xf32>, vector<2x10xf32> -> vector<2x10xf32>
    %c0_13 = arith.constant 0 : index
    %c0_14 = arith.constant 0 : index
    %c0_15 = arith.constant 0 : index
    %18 = vector.load %arg5[%c0_13, %c0_14, %c0_15] : memref<3x1x10xf32, #tpu.memory_space<vmem>>, vector<1x1x10xf32>
    %19 = vector.shape_cast %18 : vector<1x1x10xf32> to vector<1x10xf32>
    %20 = vector.broadcast %19 : vector<1x10xf32> to vector<2x10xf32>
    %21 = arith.addf %17, %20 : vector<2x10xf32>
    %cst_16 = arith.constant dense<0xFF800000> : vector<2xf32>
    %22 = vector.multi_reduction <maximumf>, %21, %cst_16 [1] : vector<2x10xf32> to vector<2xf32>
    %23 = vector.shape_cast %22 : vector<2xf32> to vector<2x1xf32>
    %24 = tpu.iota {dimensions = array<i32: 1>} : vector<2x10xi32>
    %25 = vector.broadcast %23 : vector<2x1xf32> to vector<2x10xf32>
    %26 = arith.cmpf oeq, %21, %25 : vector<2x10xf32>
    %c10_i32 = arith.constant 10 : i32
    %27 = vector.broadcast %c10_i32 : i32 to vector<2x10xi32>
    %28 = arith.select %26, %24, %27 : vector<2x10xi1>, vector<2x10xi32>
    %cst_17 = arith.constant dense<2147483647> : vector<2xi32>
    %29 = vector.multi_reduction <minsi>, %28, %cst_17 [1] : vector<2x10xi32> to vector<2xi32>
    %30 = vector.shape_cast %29 : vector<2xi32> to vector<2x1xi32>
    %31 = vector.broadcast %30 : vector<2x1xi32> to vector<2x10xi32>
    %32 = arith.cmpi eq, %31, %13 : vector<2x10xi32>
    %33 = arith.extui %32 : vector<2x10xi1> to vector<2x10xi32>
    %34 = arith.sitofp %33 : vector<2x10xi32> to vector<2x10xf32>
    %35 = arith.addf %12, %34 : vector<2x10xf32>
    %36 = vector.extract_strided_slice %11 {offsets = [0, 32], sizes = [2, 32], strides = [1, 1]} : vector<2x96xf32> to vector<2x32xf32>
    %c1 = arith.constant 1 : index
    %c0_18 = arith.constant 0 : index
    %c0_19 = arith.constant 0 : index
    %37 = vector.load %arg4[%c1, %c0_18, %c0_19] : memref<3x32x10xf32, #tpu.memory_space<vmem>>, vector<1x32x10xf32>
    %38 = vector.shape_cast %37 : vector<1x32x10xf32> to vector<32x10xf32>
    %cst_20 = arith.constant dense<0.000000e+00> : vector<2x10xf32>
    %39 = tpu.matmul %36, %38, %cst_20 {dimension_numbers = #tpu.dot_dimension_numbers<[1], [0], [0], [1], [0, 0, 1, 1], [], []>} : vector<2x32xf32>, vector<32x10xf32>, vector<2x10xf32> -> vector<2x10xf32>
    %c1_21 = arith.constant 1 : index
    %c0_22 = arith.constant 0 : index
    %c0_23 = arith.constant 0 : index
    %40 = vector.load %arg5[%c1_21, %c0_22, %c0_23] : memref<3x1x10xf32, #tpu.memory_space<vmem>>, vector<1x1x10xf32>
    %41 = vector.shape_cast %40 : vector<1x1x10xf32> to vector<1x10xf32>
    %42 = vector.broadcast %41 : vector<1x10xf32> to vector<2x10xf32>
    %43 = arith.addf %39, %42 : vector<2x10xf32>
    %cst_24 = arith.constant dense<0xFF800000> : vector<2xf32>
    %44 = vector.multi_reduction <maximumf>, %43, %cst_24 [1] : vector<2x10xf32> to vector<2xf32>
    %45 = vector.shape_cast %44 : vector<2xf32> to vector<2x1xf32>
    %46 = tpu.iota {dimensions = array<i32: 1>} : vector<2x10xi32>
    %47 = vector.broadcast %45 : vector<2x1xf32> to vector<2x10xf32>
    %48 = arith.cmpf oeq, %43, %47 : vector<2x10xf32>
    %c10_i32_25 = arith.constant 10 : i32
    %49 = vector.broadcast %c10_i32_25 : i32 to vector<2x10xi32>
    %50 = arith.select %48, %46, %49 : vector<2x10xi1>, vector<2x10xi32>
    %cst_26 = arith.constant dense<2147483647> : vector<2xi32>
    %51 = vector.multi_reduction <minsi>, %50, %cst_26 [1] : vector<2x10xi32> to vector<2xi32>
    %52 = vector.shape_cast %51 : vector<2xi32> to vector<2x1xi32>
    %53 = vector.broadcast %52 : vector<2x1xi32> to vector<2x10xi32>
    %54 = arith.cmpi eq, %53, %13 : vector<2x10xi32>
    %55 = arith.extui %54 : vector<2x10xi1> to vector<2x10xi32>
    %56 = arith.sitofp %55 : vector<2x10xi32> to vector<2x10xf32>
    %57 = arith.addf %35, %56 : vector<2x10xf32>
    %58 = vector.extract_strided_slice %11 {offsets = [0, 64], sizes = [2, 32], strides = [1, 1]} : vector<2x96xf32> to vector<2x32xf32>
    %c2 = arith.constant 2 : index
    %c0_27 = arith.constant 0 : index
    %c0_28 = arith.constant 0 : index
    %59 = vector.load %arg4[%c2, %c0_27, %c0_28] : memref<3x32x10xf32, #tpu.memory_space<vmem>>, vector<1x32x10xf32>
    %60 = vector.shape_cast %59 : vector<1x32x10xf32> to vector<32x10xf32>
    %cst_29 = arith.constant dense<0.000000e+00> : vector<2x10xf32>
    %61 = tpu.matmul %58, %60, %cst_29 {dimension_numbers = #tpu.dot_dimension_numbers<[1], [0], [0], [1], [0, 0, 1, 1], [], []>} : vector<2x32xf32>, vector<32x10xf32>, vector<2x10xf32> -> vector<2x10xf32>
    %c2_30 = arith.constant 2 : index
    %c0_31 = arith.constant 0 : index
    %c0_32 = arith.constant 0 : index
    %62 = vector.load %arg5[%c2_30, %c0_31, %c0_32] : memref<3x1x10xf32, #tpu.memory_space<vmem>>, vector<1x1x10xf32>
    %63 = vector.shape_cast %62 : vector<1x1x10xf32> to vector<1x10xf32>
    %64 = vector.broadcast %63 : vector<1x10xf32> to vector<2x10xf32>
    %65 = arith.addf %61, %64 : vector<2x10xf32>
    %cst_33 = arith.constant dense<0xFF800000> : vector<2xf32>
    %66 = vector.multi_reduction <maximumf>, %65, %cst_33 [1] : vector<2x10xf32> to vector<2xf32>
    %67 = vector.shape_cast %66 : vector<2xf32> to vector<2x1xf32>
    %68 = tpu.iota {dimensions = array<i32: 1>} : vector<2x10xi32>
    %69 = vector.broadcast %67 : vector<2x1xf32> to vector<2x10xf32>
    %70 = arith.cmpf oeq, %65, %69 : vector<2x10xf32>
    %c10_i32_34 = arith.constant 10 : i32
    %71 = vector.broadcast %c10_i32_34 : i32 to vector<2x10xi32>
    %72 = arith.select %70, %68, %71 : vector<2x10xi1>, vector<2x10xi32>
    %cst_35 = arith.constant dense<2147483647> : vector<2xi32>
    %73 = vector.multi_reduction <minsi>, %72, %cst_35 [1] : vector<2x10xi32> to vector<2xi32>
    %74 = vector.shape_cast %73 : vector<2xi32> to vector<2x1xi32>
    %75 = vector.broadcast %74 : vector<2x1xi32> to vector<2x10xi32>
    %76 = arith.cmpi eq, %75, %13 : vector<2x10xi32>
    %77 = arith.extui %76 : vector<2x10xi1> to vector<2x10xi32>
    %78 = arith.sitofp %77 : vector<2x10xi32> to vector<2x10xf32>
    %79 = arith.addf %57, %78 : vector<2x10xf32>
    %cst_36 = arith.constant dense<0xFF800000> : vector<2xf32>
    %80 = vector.multi_reduction <maximumf>, %79, %cst_36 [1] : vector<2x10xf32> to vector<2xf32>
    %81 = vector.shape_cast %80 : vector<2xf32> to vector<2x1xf32>
    %82 = tpu.iota {dimensions = array<i32: 1>} : vector<2x10xi32>
    %83 = vector.broadcast %81 : vector<2x1xf32> to vector<2x10xf32>
    %84 = arith.cmpf oeq, %79, %83 : vector<2x10xf32>
    %c10_i32_37 = arith.constant 10 : i32
    %85 = vector.broadcast %c10_i32_37 : i32 to vector<2x10xi32>
    %86 = arith.select %84, %82, %85 : vector<2x10xi1>, vector<2x10xi32>
    %cst_38 = arith.constant dense<2147483647> : vector<2xi32>
    %87 = vector.multi_reduction <minsi>, %86, %cst_38 [1] : vector<2x10xi32> to vector<2xi32>
    %88 = vector.shape_cast %87 : vector<2xi32> to vector<2x1xi32>
    %c0_39 = arith.constant 0 : index
    %c0_40 = arith.constant 0 : index
    %89 = vector.load %arg6[%c0_39, %c0_40] : memref<2x1xi32, #tpu.memory_space<vmem>>, vector<2x1xi32>
    tpu.vector_store %arg6[%c0_39, %c0_40], %88 {strides = array<i32>} : memref<2x1xi32, #tpu.memory_space<vmem>>, vector<2x1xi32>,
    return
  }
  func.func @transform_0(%arg0: i32) -> (i32, i32) {
    %c0_i32 = arith.constant 0 : i32
    %c0_i32_0 = arith.constant 0 : i32
    return %arg0, %c0_i32 : i32, i32
  }
  func.func @transform_1(%arg0: i32) -> (i32, i32) {
    %c0_i32 = arith.constant 0 : i32
    %c0_i32_0 = arith.constant 0 : i32
    %c0_i32_1 = arith.constant 0 : i32
    return %c0_i32, %c0_i32_0 : i32, i32
  }
  func.func @transform_2(%arg0: i32) -> (i32, i32) {
    %c0_i32 = arith.constant 0 : i32
    %c0_i32_0 = arith.constant 0 : i32
    %c0_i32_1 = arith.constant 0 : i32
    return %c0_i32, %c0_i32_0 : i32, i32
  }
  func.func @transform_3(%arg0: i32) -> (i32, i32, i32) {
    %c0_i32 = arith.constant 0 : i32
    %c0_i32_0 = arith.constant 0 : i32
    %c0_i32_1 = arith.constant 0 : i32
    %c0_i32_2 = arith.constant 0 : i32
    return %c0_i32, %c0_i32_0, %c0_i32_1 : i32, i32, i32
  }
  func.func @transform_4(%arg0: i32) -> (i32, i32, i32) {
    %c0_i32 = arith.constant 0 : i32
    %c0_i32_0 = arith.constant 0 : i32
    %c0_i32_1 = arith.constant 0 : i32
    %c0_i32_2 = arith.constant 0 : i32
    return %c0_i32, %c0_i32_0, %c0_i32_1 : i32, i32, i32
  }
  func.func @transform_5(%arg0: i32) -> (i32, i32) {
    %c0_i32 = arith.constant 0 : i32
    %c0_i32_0 = arith.constant 0 : i32
    return %arg0, %c0_i32 : i32, i32
  }
}

</mosaic_0001>

<bundles_post_ra>
// kernel: tpu_custom_call.1
= control target key start
LH: loop header
LB: loop body
LE: loop exit
PB: predicated region body
PF: predicated region fallthrough
CT: control target
= control target key end

     0   :  { %vm369_vm0 = vcmask 1041408   ;;  %vm272_vm1 = vcmask 293888   ;;  %vm726_vm2 = vcmask 785408   ;;  %v1517_v59 = vmov 0.0   ;;  %s1519_s20 = smov 96   ;;  %s1520_s25 = smov 64   ;;  %s1953_s1 = inlined_call_operand.vmem [shape: bf16[36,96], index: 1, kind: input, shape index: {}]   ;;  %s1954_s0 = inlined_call_operand.vmem [shape: bf16[512,36], index: 0, kind: input, shape index: {}]   ;;  %s1955_s2 = inlined_call_operand.vmem [shape: f32[1,96], index: 2, kind: input, shape index: {}]   ;;  %s1956_s3 = inlined_call_operand.vmem [shape: f32[3,32,10], index: 3, kind: input, shape index: {}]   ;;  %s1957_s4 = inlined_call_operand.vmem [shape: f32[3,1,10], index: 4, kind: input, shape index: {}]   ;;  %s1958_s5 = inlined_call_operand.vmem [shape: s32[2,1], index: 5, kind: output, shape index: {}]  }
   0x1   :  { %v1482_v0 = vld [vmem:[%s1953_s1 + $0x10] ss:$0 sps:$4 sm:$0x33]   ;;  %v1483_v1 = vld [vmem:[%s1953_s1 + $0x8] sm:$0xff]   ;;  %v1485_v3 = vld [vmem:[%s1954_s0] sm:$0xff]   ;;  %vm1518_vm3 = vmmov 0  }
   0x2   :  { %1476 = vmatprep.subr.msk.bf16.mxu0 %vm369_vm0, %v1482_v0  ;;  %v371_v2 = vsel %vm369_vm0, %v1482_v0, 0  ;;  %1477 = vmatprep.subr.msk.bf16.mxu1 %vm369_vm0, %v1482_v0  ;;  %v1484_v4 = vld [vmem:[%s1953_s1] sm:$0xff]   ;;  %v1486_v5 = vld [vmem:[%s1954_s0 + $0x8] sm:$0xff]   ;;  %v1487_v6 = vld [vmem:[%s1954_s0 + $0x10] sm:$0xff]   ;;  %vm882_vm4 = vcmask 1041409   ;;  %vm884_vm5 = vcmask 261120  }
   0x3   :  { %1368 = vmatpush3.bf16.msra.mxu0 %v371_v2  ;;  %1473 = vmatpush3.bf16.msra.mxu1 %v371_v2  ;;  %v1488_v7 = vld [vmem:[%s1954_s0 + $0x18] sm:$0xff]   ;;  %v1489_v8 = vld [vmem:[%s1954_s0 + $0x20] sm:$0xff]   ;;  %v1506_v10 = vld [vmem:[%s1954_s0 + $0xa8] sm:$0xff]   ;;  %vm957_vm6 = vcmask 74752  }
   0x4   :  { %1369 = vmatprep.subr.bf16.mxu0 %v1483_v1  ;;  %1471 = vmatprep.subr.bf16.mxu1 %v1483_v1  ;;  %v1505_v9 = vld [vmem:[%s1954_s0 + $0xa0] sm:$0xff]   ;;  %v1507_v11 = vld [vmem:[%s1954_s0 + $0xb0] sm:$0xff]   ;;  %v1490_v12 = vld [vmem:[%s1954_s0 + $0x28] sm:$0xff]  }
   0x5   :  { %1373 = vmatprep.mubr.msk.bf16.mxu0 %vm272_vm1, %v1485_v3  ;;  %1413 = vmatprep.mubr.msk.bf16.mxu1 %vm272_vm1, %v1505_v9  ;;  %v1491_v13 = vld [vmem:[%s1954_s0 + $0x30] sm:$0xff]   ;;  %v1508_v14 = vld [vmem:[%s1954_s0 + $0xb8] sm:$0xff]   ;;  %v1509_v15 = vld [vmem:[%s1954_s0 + $0xc0] sm:$0xff]  }
   0x6   :  { %v1492_v16 = vld [vmem:[%s1954_s0 + $0x38] sm:$0xff]   ;;  %v1493_v17 = vld [vmem:[%s1954_s0 + $0x40] sm:$0xff]   ;;  %v1510_v18 = vld [vmem:[%s1954_s0 + $0xc8] sm:$0xff]  }
   0x7   :  { %1370 = vmatpush3.bf16.msra.mxu0 %v1483_v1  ;;  %1474 = vmatpush3.bf16.msra.mxu1 %v1483_v1  ;;  %v1511_v19 = vld [vmem:[%s1954_s0 + $0xd0] sm:$0xff]   ;;  %v1494_v20 = vld [vmem:[%s1954_s0 + $0x48] sm:$0xff]   ;;  %v1512_v22 = vld [vmem:[%s1954_s0 + $0xd8] sm:$0xff]  }
   0x8   :  { %1371 = vmatprep.subr.bf16.mxu0 %v1484_v4  ;;  %1472 = vmatprep.subr.bf16.mxu1 %v1484_v4  ;;  %v1495_v21 = vld [vmem:[%s1954_s0 + $0x50] sm:$0xff]   ;;  %v1513_v23 = vld [vmem:[%s1954_s0 + $0xe0] sm:$0xff]   ;;  %v1496_v24 = vld [vmem:[%s1954_s0 + $0x58] sm:$0xff]  }
   0x9   :  { %v1497_v25 = vld [vmem:[%s1954_s0 + $0x60] sm:$0xff]   ;;  %v1514_v26 = vld [vmem:[%s1954_s0 + $0xe8] sm:$0xff]   ;;  %v1515_v27 = vld [vmem:[%s1954_s0 + $0xf0] sm:$0xff]  }
   0xa   :  { %v1498_v28 = vld [vmem:[%s1954_s0 + $0x68] sm:$0xff]   ;;  %v1499_v29 = vld [vmem:[%s1954_s0 + $0x70] sm:$0xff]   ;;  %v1516_v30 = vld [vmem:[%s1954_s0 + $0xf8] sm:$0xff]  }
   0xb   :  { %1372 = vmatpush3.bf16.msra.mxu0 %v1484_v4  ;;  %1475 = vmatpush3.bf16.msra.mxu1 %v1484_v4  ;;  %v1500_v31 = vld [vmem:[%s1954_s0 + $0x78] sm:$0xff]   ;;  %v1501_v32 = vld [vmem:[%s1954_s0 + $0x80] sm:$0xff]   ;;  %v1502_v33 = vld [vmem:[%s1954_s0 + $0x88] sm:$0xff]  }
   0xc   :  { %v1503_v34 = vld [vmem:[%s1954_s0 + $0x90] sm:$0xff]   ;;  %v1504_v35 = vld [vmem:[%s1954_s0 + $0x98] sm:$0xff]   ;;  %v1691_v37 = vld [vmem:[%s1955_s2] ss:$0 sm:$0xff]  ;;  %1437 = vmatprep.subr.mxu1 %v1517_v59 }
   0xd   :  { %v872_v60 = vld [vmem:[%s1956_s3 + $0x18] sm:$0xff]  ;;  %v871_v61 = vld [vmem:[%s1956_s3 + $0x10] sm:$0xff]  ;;  %v870_v3 = vld [vmem:[%s1956_s3 + $0x8] sm:$0xff] }
   0xe   :  { %1374 = vmatmul.mubr.msk.bf16.vlgmr.msra.gmra.mxu0 %vm272_vm1, %v1486_v5  ;;  %1414 = vmatmul.mubr.msk.bf16.vlgmr.msra.gmra.mxu1 %vm272_vm1, %v1506_v10  ;;  %v869_v9 = vld [vmem:[%s1956_s3] sm:$0xff] }
   0xf   :  { %1377 = vmatprep.mubr.msk.bf16.mxu0 %vm272_vm1, %v1487_v6  ;;  %1417 = vmatprep.mubr.msk.bf16.mxu1 %vm272_vm1, %v1507_v11 }
  0x10   :  { %1438 = vmatpush3.msra.mxu1 %v872_v60 }
  0x11   :  { %1439 = vmatprep.subr.mxu1 %v1517_v59 }
  0x12   :  { %1440 = vmatpush3.msra.mxu1 %v871_v61 }
  0x13   :  { %1441 = vmatprep.subr.mxu1 %v1517_v59 }
  0x14   :  { %1442 = vmatpush3.msra.mxu1 %v870_v3 }
  0x15   :  { %1443 = vmatprep.subr.mxu1 %v1517_v59 }
  0x16   :  { %1378 = vmatmul.mubr.msk.bf16.gmra.mxu0 %vm272_vm1, %v1488_v7  ;;  %1418 = vmatmul.mubr.msk.bf16.gmra.mxu1 %vm272_vm1, %v1508_v14 }
  0x17   :  { %1381 = vmatprep.mubr.msk.bf16.mxu0 %vm272_vm1, %v1489_v8  ;;  %1421 = vmatprep.mubr.msk.bf16.mxu1 %vm272_vm1, %v1509_v15 }
  0x18   :  { %1444 = vmatpush3.msra.mxu1 %v869_v9 }
  0x19   :  { %1448 = vmatprep.subr.mxu1 %v1517_v59 }
  0x1e   :  { %1382 = vmatmul.mubr.msk.bf16.gmra.mxu0 %vm272_vm1, %v1490_v12  ;;  %1422 = vmatmul.mubr.msk.bf16.gmra.mxu1 %vm272_vm1, %v1510_v18 }
  0x1f   :  { %1385 = vmatprep.mubr.msk.bf16.mxu0 %vm272_vm1, %v1491_v13  ;;  %1425 = vmatprep.mubr.msk.bf16.mxu1 %vm272_vm1, %v1511_v19 }
  0x26   :  { %1386 = vmatmul.mubr.msk.bf16.gmra.mxu0 %vm272_vm1, %v1492_v16  ;;  %1426 = vmatmul.mubr.msk.bf16.gmra.mxu1 %vm272_vm1, %v1512_v22 }
  0x27   :  { %1389 = vmatprep.mubr.msk.bf16.mxu0 %vm272_vm1, %v1493_v17  ;;  %1429 = vmatprep.mubr.msk.bf16.mxu1 %vm272_vm1, %v1513_v23 }
  0x2e   :  { %1390 = vmatmul.mubr.msk.bf16.gmra.mxu0 %vm272_vm1, %v1494_v20  ;;  %1430 = vmatmul.mubr.msk.bf16.gmra.mxu1 %vm272_vm1, %v1514_v26 }
  0x2f   :  { %1393 = vmatprep.mubr.msk.bf16.mxu0 %vm272_vm1, %v1495_v21  ;;  %1433 = vmatprep.mubr.msk.bf16.mxu1 %vm272_vm1, %v1515_v27 }
  0x36   :  { %1394 = vmatmul.mubr.msk.bf16.gmra.mxu0 %vm272_vm1, %v1496_v24  ;;  %1434 = vmatmul.mubr.msk.bf16.gmra.mxu1 %vm272_vm1, %v1516_v30 }
  0x37   :  { %1397 = vmatprep.mubr.msk.bf16.mxu0 %vm272_vm1, %v1497_v25  ;;  %1445 = vmatprep.mubr.msk.f32.mxu1 %vm1518_vm3, %v1517_v59 }
  0x3e   :  { %1398 = vmatmul.mubr.msk.bf16.gmra.mxu0 %vm272_vm1, %v1498_v28 }
  0x3f   :  { %1401 = vmatprep.mubr.msk.bf16.mxu0 %vm272_vm1, %v1499_v29 }
  0x46   :  { %1402 = vmatmul.mubr.msk.bf16.gmra.mxu0 %vm272_vm1, %v1500_v31 }
  0x47   :  { %1405 = vmatprep.mubr.msk.bf16.mxu0 %vm272_vm1, %v1501_v32 }
  0x4e   :  { %1406 = vmatmul.mubr.msk.bf16.gmra.mxu0 %vm272_vm1, %v1502_v33 }
  0x4f   :  { %1409 = vmatprep.mubr.msk.bf16.mxu0 %vm272_vm1, %v1503_v34 }
  0x56   :  { %1410 = vmatmul.mubr.msk.bf16.gmra.mxu0 %vm272_vm1, %v1504_v35 }
  0xce   :  { %v1375_v36 = vpop.f32.mrf.mxu0 }
  0xcf   :  { %v416_v41 = vadd.f32 %v1375_v36, %v1691_v37 }
  0xd0   :  { %v407_v38 = vpop.f32.mrf.mxu0 }
  0xd1   :  { %v408_v39 = vadd.f32 %v1691_v37, %v407_v38  ;;  %v664_v47 = vmax.f32 %v416_v41, 0.0  ;;  %v1735_v38 = vpop.f32.mrf.mxu1 }
  0xd2   :  { %v1376_v40 = vpop.f32.mrf.mxu0 }
  0xd3   :  { %v662_v43 = vmax.f32 %v408_v39, 0.0  ;;  %v419_v44 = vadd.f32 %v1376_v40, %v1691_v37  ;;  %v730_v56 = vsel %vm726_vm2, %v664_v47, 0.0 }
  0xd4   :  { %v410_v42 = vpop.f32.mrf.mxu0 }
  0xd5   :  { %v411_v45 = vadd.f32 %v1691_v37, %v410_v42  ;;  %v727_v50 = vsel %vm726_vm2, %v662_v43, 0.0  ;;  %v665_v51 = vmax.f32 %v419_v44, 0.0 }
  0xd6   :  { %v1379_v46 = vpop.f32.mrf.mxu0 }
  0xd7   :  { %v663_v48 = vmax.f32 %v411_v45, 0.0  ;;  %v432_v57 = vadd.f32 %v1379_v46, %v1691_v37  ;;  %v732_v0 = vsel %vm726_vm2, %v665_v51, 0.0 }
  0xd8   :  { %v423_v49 = vpop.f32.mrf.mxu0 }
  0xd9   :  { %v728_v52 = vsel %vm726_vm2, %v663_v48, 0.0  ;;  %v424_v53 = vadd.f32 %v1691_v37, %v423_v49  ;;  %v668_v6 = vmax.f32 %v432_v57, 0.0  ;;  %v1742_v49 = vpop.f32.mrf.mxu1 }
  0xda   :  { %v729_v54 = vadd.f32 %v728_v52, %v727_v50  ;;  %v1380_v55 = vpop.f32.mrf.mxu0 }
  0xdb   :  { %v666_v58 = vmax.f32 %v424_v53, 0.0  ;;  %v435_v1 = vadd.f32 %v1380_v55, %v1691_v37  ;;  %v738_v17 = vsel %vm726_vm2, %v668_v6, 0.0  ;;  %v1747_v61 = vpop.f32.mrf.mxu1 }
  0xdc   :  { %v731_v62 = vadd.f32 %v730_v56, %v729_v54  ;;  %v426_v63 = vpop.f32.mrf.mxu0 }
  0xdd   :  { %v427_v2 = vadd.f32 %v1691_v37, %v426_v63  ;;  %v734_v7 = vsel %vm726_vm2, %v666_v58, 0.0  ;;  %v669_v12 = vmax.f32 %v435_v1, 0.0 }
  0xde   :  { %v733_v4 = vadd.f32 %v732_v0, %v731_v62  ;;  %v1383_v5 = vpop.f32.mrf.mxu0 }
  0xdf   :  { %v667_v8 = vmax.f32 %v427_v2, 0.0  ;;  %v448_v18 = vadd.f32 %v1383_v5, %v1691_v37  ;;  %v740_v22 = vsel %vm726_vm2, %v669_v12, 0.0 }
  0xe0   :  { %v735_v10 = vadd.f32 %v734_v7, %v733_v4  ;;  %v439_v11 = vpop.f32.mrf.mxu0 }
  0xe1   :  { %v736_v13 = vsel %vm726_vm2, %v667_v8, 0.0  ;;  %v440_v14 = vadd.f32 %v1691_v37, %v439_v11  ;;  %v672_v27 = vmax.f32 %v448_v18, 0.0  ;;  %v1754_v8 = vpop.f32.mrf.mxu1 }
  0xe2   :  { %v737_v15 = vadd.f32 %v736_v13, %v735_v10  ;;  %v1384_v16 = vpop.f32.mrf.mxu0 }
  0xe3   :  { %v670_v19 = vmax.f32 %v440_v14, 0.0  ;;  %v451_v23 = vadd.f32 %v1384_v16, %v1691_v37  ;;  %v746_v39 = vsel %vm726_vm2, %v672_v27, 0.0 }
  0xe4   :  { %v739_v20 = vadd.f32 %v738_v17, %v737_v15  ;;  %v442_v21 = vpop.f32.mrf.mxu0 }
  0xe5   :  { %v443_v24 = vadd.f32 %v1691_v37, %v442_v21  ;;  %v742_v28 = vsel %vm726_vm2, %v670_v19, 0.0  ;;  %v673_v32 = vmax.f32 %v451_v23, 0.0  ;;  %v1759_v19 = vpop.f32.mrf.mxu1 }
  0xe6   :  { %v741_v25 = vadd.f32 %v740_v22, %v739_v20  ;;  %v1387_v26 = vpop.f32.mrf.mxu0 }
  0xe7   :  { %v671_v29 = vmax.f32 %v443_v24, 0.0  ;;  %v464_v40 = vadd.f32 %v1387_v26, %v1691_v37  ;;  %v748_v44 = vsel %vm726_vm2, %v673_v32, 0.0 }
  0xe8   :  { %v743_v30 = vadd.f32 %v742_v28, %v741_v25  ;;  %v455_v31 = vpop.f32.mrf.mxu0 }
  0xe9   :  { %v744_v33 = vsel %vm726_vm2, %v671_v29, 0.0  ;;  %v456_v34 = vadd.f32 %v1691_v37, %v455_v31  ;;  %v676_v50 = vmax.f32 %v464_v40, 0.0 }
  0xea   :  { %v745_v35 = vadd.f32 %v744_v33, %v743_v30  ;;  %v1388_v36 = vpop.f32.mrf.mxu0  ;;  %v1766_v30 = vpop.f32.mrf.mxu1 }
  0xeb   :  { %v674_v41 = vmax.f32 %v456_v34, 0.0  ;;  %v467_v45 = vadd.f32 %v1388_v36, %v1691_v37  ;;  %v754_v62 = vsel %vm726_vm2, %v676_v50, 0.0 }
  0xec   :  { %v747_v42 = vadd.f32 %v746_v39, %v745_v35  ;;  %v458_v43 = vpop.f32.mrf.mxu0 }
  0xed   :  { %v459_v46 = vadd.f32 %v1691_v37, %v458_v43  ;;  %v750_v51 = vsel %vm726_vm2, %v674_v41, 0.0  ;;  %v677_v55 = vmax.f32 %v467_v45, 0.0  ;;  %v1771_v43 = vpop.f32.mrf.mxu1 }
  0xee   :  { %v749_v47 = vadd.f32 %v748_v44, %v747_v42  ;;  %v1391_v48 = vpop.f32.mrf.mxu0 }
  0xef   :  { %v675_v52 = vmax.f32 %v459_v46, 0.0  ;;  %v480_v63 = vadd.f32 %v1391_v48, %v1691_v37  ;;  %v756_v3 = vsel %vm726_vm2, %v677_v55, 0.0  ;;  %v1778_v55 = vpop.f32.mrf.mxu1 }
  0xf0   :  { %v751_v53 = vadd.f32 %v750_v51, %v749_v47  ;;  %v471_v54 = vpop.f32.mrf.mxu0 }
  0xf1   :  { %v752_v56 = vsel %vm726_vm2, %v675_v52, 0.0  ;;  %v472_v57 = vadd.f32 %v1691_v37, %v471_v54  ;;  %v680_v9 = vmax.f32 %v480_v63, 0.0 }
  0xf2   :  { %v753_v58 = vadd.f32 %v752_v56, %v751_v53  ;;  %v1392_v60 = vpop.f32.mrf.mxu0 }
  0xf3   :  { %v678_v0 = vmax.f32 %v472_v57, 0.0  ;;  %v483_v4 = vadd.f32 %v1392_v60, %v1691_v37  ;;  %v762_v20 = vsel %vm726_vm2, %v680_v9, 0.0 }
  0xf4   :  { %v755_v1 = vadd.f32 %v754_v62, %v753_v58  ;;  %v474_v2 = vpop.f32.mrf.mxu0 }
  0xf5   :  { %v475_v5 = vadd.f32 %v1691_v37, %v474_v2  ;;  %v758_v10 = vsel %vm726_vm2, %v678_v0, 0.0  ;;  %v681_v14 = vmax.f32 %v483_v4, 0.0  ;;  %v1783_v4 = vpop.f32.mrf.mxu1 }
  0xf6   :  { %v757_v6 = vadd.f32 %v756_v3, %v755_v1  ;;  %v1395_v7 = vpop.f32.mrf.mxu0 }
  0xf7   :  { %v679_v11 = vmax.f32 %v475_v5, 0.0  ;;  %v496_v21 = vadd.f32 %v1395_v7, %v1691_v37  ;;  %v764_v25 = vsel %vm726_vm2, %v681_v14, 0.0 }
  0xf8   :  { %v759_v12 = vadd.f32 %v758_v10, %v757_v6  ;;  %v487_v13 = vpop.f32.mrf.mxu0 }
  0xf9   :  { %v760_v15 = vsel %vm726_vm2, %v679_v11, 0.0  ;;  %v488_v16 = vadd.f32 %v1691_v37, %v487_v13  ;;  %v684_v31 = vmax.f32 %v496_v21, 0.0 }
  0xfa   :  { %v761_v17 = vadd.f32 %v760_v15, %v759_v12  ;;  %v1396_v18 = vpop.f32.mrf.mxu0 }
  0xfb   :  { %v682_v22 = vmax.f32 %v488_v16, 0.0  ;;  %v499_v26 = vadd.f32 %v1396_v18, %v1691_v37  ;;  %v770_v44 = vsel %vm726_vm2, %v684_v31, 0.0  ;;  %v1790_v16 = vpop.f32.mrf.mxu1 }
  0xfc   :  { %v763_v23 = vadd.f32 %v762_v20, %v761_v17  ;;  %v490_v24 = vpop.f32.mrf.mxu0 }
  0xfd   :  { %v491_v27 = vadd.f32 %v1691_v37, %v490_v24  ;;  %v766_v32 = vsel %vm726_vm2, %v682_v22, 0.0  ;;  %v685_v36 = vmax.f32 %v499_v26, 0.0 }
  0xfe   :  { %v765_v28 = vadd.f32 %v764_v25, %v763_v23  ;;  %v1399_v29 = vpop.f32.mrf.mxu0 }
  0xff   :  { %v683_v33 = vmax.f32 %v491_v27, 0.0  ;;  %v512_v45 = vadd.f32 %v1399_v29, %v1691_v37  ;;  %v772_v50 = vsel %vm726_vm2, %v685_v36, 0.0 }
 0x100   :  { %v767_v34 = vadd.f32 %v766_v32, %v765_v28  ;;  %v503_v35 = vpop.f32.mrf.mxu0  ;;  %v1795_v28 = vpop.f32.mrf.mxu1 }
 0x101   :  { %v768_v39 = vsel %vm726_vm2, %v683_v33, 0.0  ;;  %v504_v40 = vadd.f32 %v1691_v37, %v503_v35  ;;  %v688_v56 = vmax.f32 %v512_v45, 0.0 }
 0x102   :  { %v769_v41 = vadd.f32 %v768_v39, %v767_v34  ;;  %v1400_v42 = vpop.f32.mrf.mxu0 }
 0x103   :  { %v686_v46 = vmax.f32 %v504_v40, 0.0  ;;  %v515_v51 = vadd.f32 %v1400_v42, %v1691_v37  ;;  %v778_v5 = vsel %vm726_vm2, %v688_v56, 0.0  ;;  %v1804_v42 = vpop.f32.mrf.mxu1 }
 0x104   :  { %v771_v47 = vadd.f32 %v770_v44, %v769_v41  ;;  %v506_v48 = vpop.f32.mrf.mxu0 }
 0x105   :  { %v507_v52 = vadd.f32 %v1691_v37, %v506_v48  ;;  %v774_v57 = vsel %vm726_vm2, %v686_v46, 0.0  ;;  %v689_v63 = vmax.f32 %v515_v51, 0.0 }
 0x106   :  { %v773_v53 = vadd.f32 %v772_v50, %v771_v47  ;;  %v1403_v54 = vpop.f32.mrf.mxu0 }
 0x107   :  { %v687_v58 = vmax.f32 %v507_v52, 0.0  ;;  %v528_v6 = vadd.f32 %v1403_v54, %v1691_v37  ;;  %v780_v11 = vsel %vm726_vm2, %v689_v63, 0.0  ;;  %v1809_v54 = vpop.f32.mrf.mxu1 }
 0x108   :  { %v775_v60 = vadd.f32 %v774_v57, %v773_v53  ;;  %v519_v62 = vpop.f32.mrf.mxu0 }
 0x109   :  { %v776_v0 = vsel %vm726_vm2, %v687_v58, 0.0  ;;  %v520_v1 = vadd.f32 %v1691_v37, %v519_v62  ;;  %v692_v17 = vmax.f32 %v528_v6, 0.0 }
 0x10a   :  { %v777_v2 = vadd.f32 %v776_v0, %v775_v60  ;;  %v1404_v3 = vpop.f32.mrf.mxu0 }
 0x10b   :  { %v690_v7 = vmax.f32 %v520_v1, 0.0  ;;  %v531_v12 = vadd.f32 %v1404_v3, %v1691_v37  ;;  %v786_v29 = vsel %vm726_vm2, %v692_v17, 0.0  ;;  %v615_v3 = vpop.f32.mrf.mxu1 }
 0x10c   :  { %v779_v9 = vadd.f32 %v778_v5, %v777_v2  ;;  %v522_v10 = vpop.f32.mrf.mxu0 }
 0x10d   :  { %v523_v13 = vadd.f32 %v1691_v37, %v522_v10  ;;  %v782_v18 = vsel %vm726_vm2, %v690_v7, 0.0  ;;  %v693_v23 = vmax.f32 %v531_v12, 0.0  ;;  %v568_v7 = vadd.f32 %v1691_v37, %v1742_v49 }
 0x10e   :  { %v781_v14 = vadd.f32 %v780_v11, %v779_v9  ;;  %v1407_v15 = vpop.f32.mrf.mxu0  ;;  %v579_v49 = vadd.f32 %v1747_v61, %v1691_v37 }
 0x10f   :  { %v691_v20 = vmax.f32 %v523_v13, 0.0  ;;  %v544_v31 = vadd.f32 %v1407_v15, %v1691_v37  ;;  %v788_v34 = vsel %vm726_vm2, %v693_v23, 0.0  ;;  %v571_v13 = vadd.f32 %v1691_v37, %v1754_v8  ;;  %v1428_v15 = vpop.f32.mrf.mxu1 }
 0x110   :  { %v783_v21 = vadd.f32 %v782_v18, %v781_v14  ;;  %v535_v22 = vpop.f32.mrf.mxu0  ;;  %v576_v18 = vadd.f32 %v1735_v38, %v1691_v37 }
 0x111   :  { %v784_v24 = vsel %vm726_vm2, %v691_v20, 0.0  ;;  %v536_v25 = vadd.f32 %v1691_v37, %v535_v22  ;;  %v696_v44 = vmax.f32 %v544_v31, 0.0  ;;  %v702_v20 = vmax.f32 %v568_v7, 0.0 }
 0x112   :  { %v785_v26 = vadd.f32 %v784_v24, %v783_v21  ;;  %v1408_v27 = vpop.f32.mrf.mxu0  ;;  %v703_v23 = vmax.f32 %v571_v13, 0.0  ;;  %v705_v31 = vmax.f32 %v579_v49, 0.0 }
 0x113   :  { %v694_v35 = vmax.f32 %v536_v25, 0.0  ;;  %v547_v36 = vadd.f32 %v1408_v27, %v1691_v37  ;;  %v799_v56 = vsel %vm726_vm2, %v696_v44, 0.0  ;;  %v618_v25 = vpop.f32.mrf.mxu1  ;;  %v811_v8 = vsel %vm726_vm2, %v702_v20, 0.0 }
 0x114   :  { %v787_v32 = vadd.f32 %v786_v29, %v785_v26  ;;  %v538_v33 = vpop.f32.mrf.mxu0  ;;  %v704_v26 = vmax.f32 %v576_v18, 0.0  ;;  %v584_v27 = vadd.f32 %v1691_v37, %v1766_v30  ;;  %v813_v38 = vsel %vm726_vm2, %v703_v23, 0.0 }
 0x115   :  { %v539_v39 = vadd.f32 %v1691_v37, %v538_v33  ;;  %v796_v47 = vsel %vm726_vm2, %v694_v35, 0.0  ;;  %v697_v48 = vmax.f32 %v547_v36, 0.0  ;;  %v592_v35 = vadd.f32 %v1759_v19, %v1691_v37 }
 0x116   :  { %v1802_v40 = vadd.f32 %v788_v34, %v787_v32  ;;  %v1411_v41 = vpop.f32.mrf.mxu0  ;;  %v587_v32 = vadd.f32 %v1691_v37, %v1778_v55  ;;  %v1431_v34 = vpop.f32.mrf.mxu1  ;;  %v815_v61 = vsel %vm726_vm2, %v704_v26, 0.0  ;;  %v706_v36 = vmax.f32 %v584_v27, 0.0 }
 0x117   :  { %v695_v45 = vmax.f32 %v539_v39, 0.0  ;;  %v560_v57 = vadd.f32 %v1411_v41, %v1691_v37  ;;  %v801_v63 = vsel %vm726_vm2, %v697_v48, 0.0  ;;  %v817_v41 = vsel %vm726_vm2, %v705_v31, 0.0 }
 0x118   :  { %v551_v46 = vpop.f32.mrf.mxu0  ;;  %v595_v30 = vadd.f32 %v1771_v43, %v1691_v37  ;;  %v707_v44 = vmax.f32 %v587_v32, 0.0  ;;  %v819_v55 = vsel %vm726_vm2, %v706_v36, 0.0  ;;  %v600_v48 = vadd.f32 %v1691_v37, %v1790_v16 }
 0x119   :  { %v797_v50 = vsel %vm726_vm2, %v695_v45, 0.0  ;;  %v552_v51 = vadd.f32 %v1691_v37, %v551_v46  ;;  %v700_v5 = vmax.f32 %v560_v57, 0.0  ;;  %v631_v46 = vpop.f32.mrf.mxu1  ;;  %v608_v57 = vadd.f32 %v1783_v4, %v1691_v37 }
 0x11a   :  { %v798_v52 = vadd.f32 %v797_v50, %v796_v47  ;;  %v1412_v53 = vpop.f32.mrf.mxu0  ;;  %v708_v47 = vmax.f32 %v592_v35, 0.0  ;;  %v821_v19 = vsel %vm726_vm2, %v707_v44, 0.0  ;;  %v611_v16 = vadd.f32 %v1795_v28, %v1691_v37 }
 0x11b   :  { %v698_v58 = vmax.f32 %v552_v51, 0.0  ;;  %v563_v0 = vadd.f32 %v1412_v53, %v1691_v37  ;;  %v807_v17 = vsel %vm726_vm2, %v700_v5, 0.0  ;;  %v709_v51 = vmax.f32 %v595_v30, 0.0 }
 0x11c   :  { %v800_v60 = vadd.f32 %v799_v56, %v798_v52  ;;  %v554_v62 = vpop.f32.mrf.mxu0  ;;  %v603_v52 = vadd.f32 %v1691_v37, %v1804_v42  ;;  %v1432_v56 = vpop.f32.mrf.mxu1  ;;  %v823_v43 = vsel %vm726_vm2, %v708_v47, 0.0  ;;  %v616_v5 = vadd.f32 %v1691_v37, %v615_v3 }
 0x11d   :  { %v555_v1 = vadd.f32 %v1691_v37, %v554_v62  ;;  %v803_v6 = vsel %vm726_vm2, %v698_v58, 0.0  ;;  %v701_v11 = vmax.f32 %v563_v0, 0.0  ;;  %v710_v58 = vmax.f32 %v600_v48, 0.0 }
 0x11e   :  { %v802_v2 = vadd.f32 %v801_v63, %v800_v60  ;;  %v825_v62 = vsel %vm726_vm2, %v709_v51, 0.0  ;;  %v711_v63 = vmax.f32 %v603_v52, 0.0  ;;  %v713_v7 = vmax.f32 %v611_v16, 0.0 }
 0x11f   :  { %v699_v9 = vmax.f32 %v555_v1, 0.0  ;;  %v809_v22 = vsel %vm726_vm2, %v701_v11, 0.0  ;;  %v634_v1 = vpop.f32.mrf.mxu1  ;;  %v827_v42 = vsel %vm726_vm2, %v710_v58, 0.0  ;;  %v619_v4 = vadd.f32 %v1691_v37, %v618_v25 }
 0x120   :  { %v804_v10 = vadd.f32 %v803_v6, %v802_v2  ;;  %v712_v2 = vmax.f32 %v608_v57, 0.0  ;;  %v624_v28 = vadd.f32 %v1809_v54, %v1691_v37  ;;  %v714_v13 = vmax.f32 %v616_v5, 0.0 }
 0x121   :  { %v805_v12 = vsel %vm726_vm2, %v699_v9, 0.0  ;;  %v829_v9 = vsel %vm726_vm2, %v711_v63, 0.0  ;;  %v1435_v11 = vpop.f32.mrf.mxu1  ;;  %v627_v18 = vadd.f32 %v1428_v15, %v1691_v37  ;;  %v715_v3 = vmax.f32 %v619_v4, 0.0 }
 0x122   :  { %v806_v14 = vadd.f32 %v805_v12, %v804_v10  ;;  %v831_v12 = vsel %vm726_vm2, %v712_v2, 0.0  ;;  %v835_v49 = vsel %vm726_vm2, %v714_v13, 0.0  ;;  %v632_v23 = vadd.f32 %v1691_v37, %v631_v46 }
 0x123   :  { %v717_v25 = vmax.f32 %v627_v18, 0.0  ;;  %v837_v26 = vsel %vm726_vm2, %v715_v3, 0.0  ;;  %v635_v54 = vadd.f32 %v1691_v37, %v634_v1  ;;  %v640_v15 = vadd.f32 %v1431_v34, %v1691_v37  ;;  %v1303_v3 = vld [vmem:[%s1956_s3 + $0x30] sm:$0xff] }
 0x124   :  { %v808_v21 = vadd.f32 %v807_v17, %v806_v14  ;;  %v833_v17 = vsel %vm726_vm2, %v713_v7, 0.0  ;;  %v718_v31 = vmax.f32 %v632_v23, 0.0  ;;  %v656_v48 = vadd.f32 %v1435_v11, %v1691_v37  ;;  %v1311_v23 = vld [vmem:[%s1956_s3 + $0x50] sm:$0xff] }
 0x125   :  { %v841_v32 = vsel %vm726_vm2, %v717_v25, 0.0  ;;  %v790_v51 = vrot.slane %v1802_v40, 4  ;;  %v1309_v25 = vld [vmem:[%s1956_s3 + $0x40] sm:$0xff] }
 0x126   :  { %v810_v24 = vadd.f32 %v809_v22, %v808_v21  ;;  %v647_v21 = vpop.f32.mrf.mxu1  ;;  %v716_v22 = vmax.f32 %v624_v28, 0.0  ;;  %v724_v57 = vmax.f32 %v656_v48, 0.0 }
 0x127   :  { %v648_v30 = vadd.f32 %v1691_v37, %v647_v21  ;;  %v1301_v21 = vld [vmem:[%s1956_s3 + $0x20] sm:$0xff] }
 0x128   :  { %v812_v29 = vadd.f32 %v811_v8, %v810_v24  ;;  %v1436_v27 = vpop.f32.mrf.mxu1  ;;  %v855_v1 = vsel %vm726_vm2, %v724_v57, 0.0 }
 0x12a   :  { %v814_v33 = vadd.f32 %v813_v38, %v812_v29  ;;  %v839_v29 = vsel %vm726_vm2, %v716_v22, 0.0  ;;  %v650_v36 = vpop.f32.mrf.mxu1  ;;  %v1312_v22 = vld [vmem:[%s1956_s3 + $0x58] sm:$0xff] }
 0x12b   :  { %v651_v34 = vadd.f32 %v1691_v37, %v650_v36 }
 0x12c   :  { %v816_v39 = vadd.f32 %v815_v61, %v814_v33  ;;  %v643_v33 = vadd.f32 %v1432_v56, %v1691_v37  ;;  %v719_v61 = vmax.f32 %v635_v54, 0.0  ;;  %v1298_v54 = vld [vmem:[%s1957_s4] ss:$0 sm:$0xff] }
 0x12d   :  { %v723_v56 = vmax.f32 %v651_v34, 0.0 }
 0x12e   :  { %v818_v45 = vadd.f32 %v817_v41, %v816_v39  ;;  %v720_v39 = vmax.f32 %v640_v15, 0.0  ;;  %v843_v41 = vsel %vm726_vm2, %v718_v31, 0.0  ;;  %v845_v46 = vsel %vm726_vm2, %v719_v61, 0.0  ;;  %v1306_v31 = vld [vmem:[%s1957_s4 + $0x1] ss:$0 sm:$0xff] }
 0x12f   :  { %v853_v63 = vsel %vm726_vm2, %v723_v56, 0.0 }
 0x130   :  { %v820_v50 = vadd.f32 %v819_v55, %v818_v45  ;;  %v721_v45 = vmax.f32 %v643_v33, 0.0  ;;  %v847_v55 = vsel %vm726_vm2, %v720_v39, 0.0 }
 0x132   :  { %v822_v53 = vadd.f32 %v821_v19, %v820_v50  ;;  %v722_v50 = vmax.f32 %v648_v30, 0.0  ;;  %v849_v52 = vsel %vm726_vm2, %v721_v45, 0.0 }
 0x134   :  { %v824_v60 = vadd.f32 %v823_v43, %v822_v53  ;;  %v659_v53 = vadd.f32 %v1436_v27, %v1691_v37  ;;  %v851_v58 = vsel %vm726_vm2, %v722_v50, 0.0 }
 0x136   :  { %v826_v0 = vadd.f32 %v825_v62, %v824_v60  ;;  %v791_v60 = vadd.f32 %v790_v51, %v1802_v40  ;;  %v725_v16 = vmax.f32 %v659_v53, 0.0 }
 0x138   :  { %v828_v6 = vadd.f32 %v827_v42, %v826_v0  ;;  %v792_v42 = vrot.slane %v791_v60, 2  ;;  %v857_v5 = vsel %vm726_vm2, %v725_v16, 0.0  ;;  %vm1224_vm2 = vcmask 1024  }
 0x13a   :  { %v830_v10 = vadd.f32 %v829_v9, %v828_v6  ;;  %v793_v7 = vadd.f32 %v792_v42, %v791_v60 }
 0x13c   :  { %v832_v14 = vadd.f32 %v831_v12, %v830_v10  ;;  %v794_v4 = vrot.slane %v793_v7, 1 }
 0x13e   :  { %v834_v20 = vadd.f32 %v833_v17, %v832_v14  ;;  %v795_v12 = vadd.f32 %v794_v4, %v793_v7  ;;  %v1304_v17 = vld [vmem:[%s1956_s3 + $0x38] sm:$0xff] }
 0x140   :  { %v836_v24 = vadd.f32 %v835_v49, %v834_v20  ;;  %v865_v13 = vmul.f32 0.00390625, %v795_v12  ;;  %v1302_v20 = vld [vmem:[%s1956_s3 + $0x28] sm:$0xff] }
 0x142   :  { %v838_v8 = vadd.f32 %v837_v26, %v836_v24  ;;  %v1310_v24 = vld [vmem:[%s1956_s3 + $0x48] sm:$0xff] }
 0x144   :  { %v840_v38 = vadd.f32 %v839_v29, %v838_v8 }
 0x146   :  { %v842_v35 = vadd.f32 %v841_v32, %v840_v38 }
 0x148   :  { %v844_v44 = vadd.f32 %v843_v41, %v842_v35  ;;  %v1314_v35 = vld [vmem:[%s1957_s4 + $0x2] ss:$0 sm:$0xff] }
 0x14a   :  { %v846_v47 = vadd.f32 %v845_v46, %v844_v44  ;;  %v867_v44 = vlaneseq }
 0x14c   :  { %v848_v19 = vadd.f32 %v847_v55, %v846_v47  ;;  %v1933_v45 = vand.u32 127, %v867_v44 }
 0x14e   :  { %v850_v43 = vadd.f32 %v849_v52, %v848_v19 }
 0x150   :  { %v852_v62 = vadd.f32 %v851_v58, %v850_v43 }
 0x152   :  { %v854_v0 = vadd.f32 %v853_v63, %v852_v62 }
 0x154   :  { %v856_v2 = vadd.f32 %v855_v1, %v854_v0 }
 0x156   :  { %v858_v6 = vadd.f32 %v857_v5, %v856_v2 }
 0x158   :  { %v859_v37 = vrot.slane %v858_v6, 4 }
 0x15a   :  { %v860_v9 = vadd.f32 %v859_v37, %v858_v6 }
 0x15c   :  { %v861_v10 = vrot.slane %v860_v9, 2 }
 0x15e   :  { %v862_v11 = vadd.f32 %v861_v10, %v860_v9 }
 0x160   :  { %v863_v40 = vrot.slane %v862_v11, 1 }
 0x162   :  { %v864_v28 = vadd.f32 %v863_v40, %v862_v11 }
 0x164   :  { %v866_v14 = vmul.f32 0.00390625, %v864_v28 }
 0x166   :  { %v883_v18 = vsel %vm882_vm4, %v866_v14, %v865_v13 }
 0x167   :  { %995 = vrot.lane.b32.xlu0 %v883_v18, %s1519_s20  ;;  %1446 = vmatmul.mubr.msk.f32.vlgmr.msra.gmra.mxu1 %vm884_vm5, %v883_v18 }
 0x168   :  { %1449 = vmatpush3.msra.mxu1 %v1304_v17  ;;  %1456 = vmatprep.mubr.msk.f32.mxu1 %vm1518_vm3, %v1517_v59 }
 0x169   :  { %1450 = vmatprep.subr.mxu1 %v1517_v59 }
 0x16a   :  { %1451 = vmatpush3.msra.mxu1 %v1303_v3 }
 0x16b   :  { %1106 = vrot.lane.b32.xlu0 %v883_v18, %s1520_s25  ;;  %1452 = vmatprep.subr.mxu1 %v1517_v59 }
 0x16c   :  { %1453 = vmatpush3.msra.mxu1 %v1302_v20 }
 0x16d   :  { %1454 = vmatprep.subr.mxu1 %v1517_v59 }
 0x16e   :  { %1455 = vmatpush3.msra.mxu1 %v1301_v21 }
 0x16f   :  { %1459 = vmatprep.subr.mxu1 %v1517_v59 }
 0x1d9   :  { %v996_v49 = vpop.permute.xlu0 %995 }
 0x1da   :  { %1457 = vmatmul.mubr.msk.f32.vlgmr.msra.gmra.mxu1 %vm884_vm5, %v996_v49 }
 0x1db   :  { %1460 = vmatpush3.msra.mxu1 %v1312_v22  ;;  %1467 = vmatprep.mubr.msk.f32.mxu1 %vm1518_vm3, %v1517_v59 }
 0x1dc   :  { %1461 = vmatprep.subr.mxu1 %v1517_v59 }
 0x1dd   :  { %1462 = vmatpush3.msra.mxu1 %v1311_v23  ;;  %v1107_v26 = vpop.permute.xlu0 %1106 }
 0x1de   :  { %1463 = vmatprep.subr.mxu1 %v1517_v59 }
 0x1df   :  { %1464 = vmatpush3.msra.mxu1 %v1310_v24 }
 0x1e0   :  { %1465 = vmatprep.subr.mxu1 %v1517_v59 }
 0x1e1   :  { %1466 = vmatpush3.msra.mxu1 %v1309_v25 }
 0x1e2   :  { %1468 = vmatmul.mubr.msk.f32.vlgmr.msra.gmra.mxu1 %vm884_vm5, %v1107_v26 }
 0x227   :  { %v953_v8 = vpop.f32.mrf.mxu1 }
 0x228   :  { %v954_v27 = vadd.f32 %v1298_v54, %v953_v8 }
 0x229   :  { %v1447_v29 = vpop.f32.mrf.mxu1 }
 0x22a   :  { %v958_v15 = vsel %vm957_vm6, %v954_v27, -inf }
 0x22b   :  { %959 = vmax.xlane.f32.xlu1 %v958_v15 }
 0x29a   :  { %v1065_v38 = vpop.f32.mrf.mxu1 }
 0x29b   :  { %v1066_v32 = vadd.f32 %v1306_v31, %v1065_v38 }
 0x29c   :  { %v1458_v33 = vpop.f32.mrf.mxu1 }
 0x29d   :  { %v1069_v61 = vsel %vm957_vm6, %v1066_v32, -inf }
 0x29e   :  { %1070 = vmax.xlane.f32.xlu1 %v1069_v61 }
 0x2a2   :  { %v1176_v36 = vpop.f32.mrf.mxu1 }
 0x2a3   :  { %v1177_v39 = vadd.f32 %v1314_v35, %v1176_v36 }
 0x2a4   :  { %v1469_v41 = vpop.f32.mrf.mxu1 }
 0x2a5   :  { %v1180_v30 = vsel %vm957_vm6, %v1177_v39, -inf }
 0x2a6   :  { %1181 = vmax.xlane.f32.xlu0 %v1180_v30 }
 0x2b4   :  { %v960_v46 = vpop.xlane.xlu1 %959 }
 0x2b5   :  { %vm961_vm7 = vcmp.eq.f32.partialorder %v954_v27, %v960_v46 }
 0x2b6   :  { %v962_v34 = vsel %vm961_vm7, %v1933_v45, 10 }
 0x2b7   :  { %v963_v47 = vsel %vm957_vm6, %v962_v34, 2147483647 }
 0x2b8   :  { %v965_v55 = vshra.s32 %v963_v47, 16  ;;  %v964_v62 = vand.u32 65535, %v963_v47 }
 0x2ba   :  { %v967_v48 = vcvt.s32.f32 %v965_v55  ;;  %v966_v63 = vcvt.s32.f32 %v964_v62 }
 0x2bc   :  { %968 = vmin.xlane.f32.xlu1 %v967_v48 }
 0x327   :  { %v1071_v50 = vpop.xlane.xlu1 %1070 }
 0x328   :  { %vm1072_vm8 = vcmp.eq.f32.partialorder %v1066_v32, %v1071_v50 }
 0x329   :  { %v1073_v51 = vsel %vm1072_vm8, %v1933_v45, 10 }
 0x32a   :  { %v1074_v19 = vsel %vm957_vm6, %v1073_v51, 2147483647 }
 0x32b   :  { %v1076_v52 = vshra.s32 %v1074_v19, 16  ;;  %v1075_v1 = vand.u32 65535, %v1074_v19 }
 0x32d   :  { %v1078_v53 = vcvt.s32.f32 %v1076_v52  ;;  %v1077_v42 = vcvt.s32.f32 %v1075_v1 }
 0x32f   :  { %v1182_v56 = vpop.xlane.xlu0 %1181  ;;  %1079 = vmin.xlane.f32.xlu1 %v1078_v53 }
 0x330   :  { %vm1183_vm9 = vcmp.eq.f32.partialorder %v1177_v39, %v1182_v56 }
 0x331   :  { %v1184_v43 = vsel %vm1183_vm9, %v1933_v45, 10 }
 0x332   :  { %v1185_v57 = vsel %vm957_vm6, %v1184_v43, 2147483647 }
 0x333   :  { %v1187_v58 = vshra.s32 %v1185_v57, 16  ;;  %v1186_v6 = vand.u32 65535, %v1185_v57 }
 0x335   :  { %v1189_v60 = vcvt.s32.f32 %v1187_v58  ;;  %v1188_v7 = vcvt.s32.f32 %v1186_v6 }
 0x337   :  { %1190 = vmin.xlane.f32.xlu1 %v1189_v60 }
 0x345   :  { %v969_v16 = vpop.xlane.xlu1 %968 }
 0x346   :  { %vm970_vm10 = vcmp.eq.f32.partialorder %v967_v48, %v969_v16  ;;  %v975_v11 = vcvt.f32.s32 %v969_v16 }
 0x347   :  { %v971_v0 = vsel %vm970_vm10, %v966_v63, inf }
 0x348   :  { %972 = vmin.xlane.f32.xlu1 %v971_v0  ;;  %v976_v14 = vshll.u32 %v975_v11, 16 }
 0x3b8   :  { %v1080_v2 = vpop.xlane.xlu1 %1079 }
 0x3b9   :  { %vm1081_vm11 = vcmp.eq.f32.partialorder %v1078_v53, %v1080_v2  ;;  %v1086_v10 = vcvt.f32.s32 %v1080_v2 }
 0x3ba   :  { %v1082_v5 = vsel %vm1081_vm11, %v1077_v42, inf }
 0x3bb   :  { %1083 = vmin.xlane.f32.xlu1 %v1082_v5  ;;  %v1087_v40 = vshll.u32 %v1086_v10, 16 }
 0x3c0   :  { %v1191_v37 = vpop.xlane.xlu1 %1190 }
 0x3c1   :  { %vm1192_vm12 = vcmp.eq.f32.partialorder %v1189_v60, %v1191_v37  ;;  %v1197_v18 = vcvt.f32.s32 %v1191_v37 }
 0x3c2   :  { %v1193_v9 = vsel %vm1192_vm12, %v1188_v7, inf }
 0x3c3   :  { %1194 = vmin.xlane.f32.xlu1 %v1193_v9  ;;  %v1198_v21 = vshll.u32 %v1197_v18, 16 }
 0x3d1   :  { %v973_v4 = vpop.xlane.xlu1 %972 }
 0x3d2   :  { %v974_v28 = vcvt.f32.s32 %v973_v4 }
 0x3d4   :  { %v977_v3 = vadd.s32 %v976_v14, %v974_v28 }
 0x3d6   :  { %vm978_vm14 = vcmp.eq.s32.totalorder %v977_v3, %v1933_v45 }
 0x3d7   :  { %v1300_v24 = vsel %vm978_vm14, 1.0, %v1517_v59 }
 0x444   :  { %v1084_v12 = vpop.xlane.xlu1 %1083 }
 0x445   :  { %v1085_v13 = vcvt.f32.s32 %v1084_v12 }
 0x447   :  { %v1088_v17 = vadd.s32 %v1087_v40, %v1085_v13 }
 0x449   :  { %vm1089_vm13 = vcmp.eq.s32.totalorder %v1088_v17, %v1933_v45 }
 0x44a   :  { %v1308_v49 = vsel %vm1089_vm13, 1.0, %v1517_v59 }
 0x44b   :  { %v1092_v25 = vadd.f32 %v1308_v49, %v1300_v24 }
 0x44c   :  { %v1195_v20 = vpop.xlane.xlu1 %1194 }
 0x44d   :  { %v1196_v22 = vcvt.f32.s32 %v1195_v20 }
 0x44f   :  { %v1199_v23 = vadd.s32 %v1198_v21, %v1196_v22 }
 0x451   :  { %vm1200_vm15 = vcmp.eq.s32.totalorder %v1199_v23, %v1933_v45 }
 0x452   :  { %v1316_v26 = vsel %vm1200_vm15, 1.0, %v1517_v59 }
 0x453   :  { %v1203_v54 = vadd.f32 %v1316_v26, %v1092_v25 }
 0x455   :  { %v1204_v8 = vsel %vm957_vm6, %v1203_v54, -inf }
 0x456   :  { %1205 = vmax.xlane.f32.xlu1 %v1204_v8 }
 0x4df   :  { %v1206_v27 = vpop.xlane.xlu1 %1205 }
 0x4e0   :  { %vm1207_vm0 = vcmp.eq.f32.partialorder %v1203_v54, %v1206_v27 }
 0x4e1   :  { %v1208_v29 = vsel %vm1207_vm0, %v1933_v45, 10 }
 0x4e2   :  { %v1209_v15 = vsel %vm957_vm6, %v1208_v29, 2147483647 }
 0x4e3   :  { %v1211_v31 = vshra.s32 %v1209_v15, 16  ;;  %v1210_v32 = vand.u32 65535, %v1209_v15 }
 0x4e5   :  { %v1213_v38 = vcvt.s32.f32 %v1211_v31  ;;  %v1212_v61 = vcvt.s32.f32 %v1210_v32 }
 0x4e7   :  { %1214 = vmin.xlane.f32.xlu1 %v1213_v38 }
 0x570   :  { %v1215_v33 = vpop.xlane.xlu1 %1214 }
 0x571   :  { %vm1216_vm1 = vcmp.eq.f32.partialorder %v1213_v38, %v1215_v33  ;;  %v1221_v59 = vcvt.f32.s32 %v1215_v33 }
 0x572   :  { %v1217_v35 = vsel %vm1216_vm1, %v1212_v61, inf }
 0x573   :  { %1218 = vmin.xlane.f32.xlu0 %v1217_v35  ;;  %v1222_v39 = vshll.u32 %v1221_v59, 16 }
 0x5fc   :  { %v1219_v36 = vpop.xlane.xlu0 %1218 }
 0x5fd   :  { %v1220_v41 = vcvt.f32.s32 %v1219_v36 }
 0x5ff   :  { %v1223_v30 = vadd.s32 %v1222_v39, %v1220_v41 }
 0x601   :  { %1225 = vst.msk [vmem:[%s1958_s5] sm:$0x3] %vm1224_vm2, %v1223_v30 }

</bundles_post_ra>
